<compile_context>
chip_gen: v7x
topology: tpu7x:2x2x1
jax: 0.10.0
libtpu: 0.0.40
codegen_flags: <defaults>
</compile_context>

<pallas_src>
import functools

import jax
import jax.numpy as jnp
from jax.experimental import pallas as pl
from jax.experimental.pallas import tpu as pltpu


def _round8(x: int) -> int:
    return ((x + 7) // 8) * 8


def _slab_layout(S: int, A: int, H1: int, H2: int):
    """Row offsets for the packed parameter slab. Every section starts on an
    8-row (sublane-tile) boundary so in-kernel slices are free views."""
    H1_2, H2_2 = 2 * H1, 2 * H2
    r_w1s = 0                          # (S, 2H1)   W1 rows for the state part
    r_w1a = _round8(r_w1s + S)         # (A, 2H1)   W1 rows for the action part
    r_w2 = _round8(r_w1a + A)          # (2H1, 2H2) block-diagonal W2
    r_b1 = _round8(r_w2 + H1_2)        # (1, 2H1)
    r_b2 = r_b1 + 8                    # (1, 2H2)
    r_w3 = r_b2 + 8                    # (2, 2H2)   row c = critic c's w3 in cols [c*H2:(c+1)*H2]
    r_b3 = _round8(r_w3 + 2)           # (2, 1)     b3 values at column 0
    rows = _round8(r_b3 + 2)
    cols = max(H1_2, H2_2)
    return dict(r_w1s=r_w1s, r_w1a=r_w1a, r_w2=r_w2, r_b1=r_b1, r_b2=r_b2,
                r_w3=r_w3, r_b3=r_b3, rows=rows, cols=cols)


def _critic_twin_kernel(state_ref, action_ref, p_ref, out_ref,
                        *, S, A, H1, H2, lay, precision):
    """Fused twin-critic MLP: Linear->ReLU->Linear->ReLU->Linear, both critics."""
    H1_2, H2_2 = 2 * H1, 2 * H2

    # All slices start on 8-row / column-0 boundaries -> pure views, no realign copies.
    w1s = p_ref[lay["r_w1s"]:lay["r_w1s"] + S, 0:H1_2]        # (S, 2H1)
    w1a = p_ref[lay["r_w1a"]:lay["r_w1a"] + A, 0:H1_2]        # (A, 2H1)
    w2 = p_ref[lay["r_w2"]:lay["r_w2"] + H1_2, 0:H2_2]        # (2H1, 2H2) block-diag
    b1 = p_ref[lay["r_b1"]:lay["r_b1"] + 1, 0:H1_2]           # (1, 2H1)
    b2 = p_ref[lay["r_b2"]:lay["r_b2"] + 1, 0:H2_2]           # (1, 2H2)
    w3 = p_ref[lay["r_w3"]:lay["r_w3"] + 2, 0:H2_2]           # (2, 2H2)
    b3 = p_ref[lay["r_b3"]:lay["r_b3"] + 2, 0:1]              # (2, 1)

    # Layer 1: fused concat -> h1 = state @ W1_s + action @ W1_a + b1 (both critics).
    h1 = (jnp.dot(state_ref[...], w1s,
                  preferred_element_type=jnp.float32, precision=precision)
          + jnp.dot(action_ref[...], w1a,
                    preferred_element_type=jnp.float32, precision=precision)
          + b1)
    h1 = jnp.maximum(h1, 0.0)                                  # ReLU

    # Layer 2: one block-diagonal matmul covers both critics.
    h2 = jnp.dot(h1, w2, preferred_element_type=jnp.float32,
                 precision=precision) + b2
    h2 = jnp.maximum(h2, 0.0)                                  # ReLU

    # Layer 3: (2, 2H2) contracted against (bb, 2H2) on the last dims (MXU-native
    # A @ B^T, like q @ k^T in flash attention) -> (2, bb). Batch lands in the
    # lane dimension, so the output store is lane-dense.
    q_t = jax.lax.dot_general(
        w3, h2, dimension_numbers=(((1,), (1,)), ((), ())),
        preferred_element_type=jnp.float32, precision=precision)
    out_ref[...] = (q_t + b3).astype(out_ref.dtype)


def pack_params(params, state_dim):
    """Pack stacked per-critic params (leading axis 2) into one 8-row-aligned
    f32 slab. Returns (slab, (S, A, H1, H2))."""
    f32 = jnp.float32
    w1, b1 = params["w1"].astype(f32), params["b1"].astype(f32)   # (2, D, H1), (2, 1, H1)
    w2, b2 = params["w2"].astype(f32), params["b2"].astype(f32)   # (2, H1, H2), (2, 1, H2)
    w3, b3 = params["w3"].astype(f32), params["b3"].astype(f32)   # (2, H2, 1), (2, 1, 1)
    _, D, H1 = w1.shape
    H2 = w2.shape[-1]
    S = int(state_dim)
    A = D - S
    H1_2, H2_2 = 2 * H1, 2 * H2
    lay = _slab_layout(S, A, H1, H2)

    w1_pack = jnp.concatenate([w1[0], w1[1]], axis=1)              # (D, 2H1)
    w2_bd = jnp.zeros((H1_2, H2_2), f32)
    w2_bd = w2_bd.at[:H1, :H2].set(w2[0]).at[H1:, H2:].set(w2[1])  # block-diagonal
    b1_row = jnp.concatenate([b1[0], b1[1]], axis=1)               # (1, 2H1)
    b2_row = jnp.concatenate([b2[0], b2[1]], axis=1)               # (1, 2H2)
    w3_rows = jnp.zeros((2, H2_2), f32)
    w3_rows = w3_rows.at[0, :H2].set(w3[0, :, 0]).at[1, H2:].set(w3[1, :, 0])

    slab = jnp.zeros((lay["rows"], lay["cols"]), f32)
    slab = slab.at[lay["r_w1s"]:lay["r_w1s"] + S, :H1_2].set(w1_pack[:S])
    slab = slab.at[lay["r_w1a"]:lay["r_w1a"] + A, :H1_2].set(w1_pack[S:])
    slab = slab.at[lay["r_w2"]:lay["r_w2"] + H1_2, :H2_2].set(w2_bd)
    slab = slab.at[lay["r_b1"], :H1_2].set(b1_row[0])
    slab = slab.at[lay["r_b2"], :H2_2].set(b2_row[0])
    slab = slab.at[lay["r_w3"]:lay["r_w3"] + 2, :H2_2].set(w3_rows)
    slab = slab.at[lay["r_b3"], 0].set(b3[0, 0, 0])
    slab = slab.at[lay["r_b3"] + 1, 0].set(b3[1, 0, 0])
    return slab, (S, A, H1, H2)


def _choose_batch_tile(B, block_b, min_grid_steps):
    """Whole batch when small; otherwise a large tile, optionally split so the
    'parallel' batch axis has >= min_grid_steps steps (keeps both TensorCores
    busy on v7x). Tiles smaller than the full batch are rounded to a multiple
    of 128 so the lane-dense (2, bb) output block and the (bb, S)/(bb, A)
    input blocks satisfy the (8, 128) tiling rule."""
    bb = min(B, block_b)
    if min_grid_steps > 1:
        bb = min(bb, pl.cdiv(B, min_grid_steps))
    bb = (bb // 128) * 128
    if bb < 128 or bb >= B:
        return B            # single full-batch tile (block == full dims: always legal)
    return bb


def sac_critic_twin_forward(state, action, packed_params, dims, *,
                            block_b=4096, min_grid_steps=2,
                            precision=jax.lax.Precision.HIGHEST,
                            return_stacked=False):
    """Returns (value1, value2), each (B, 1) — matches SAC_CriticTwin.forward.
    With return_stacked=True, returns the raw lane-dense (2, B) slab instead
    (avoids two extra HBM slice/reshape copies if the caller e.g. takes min)."""
    B, S = state.shape
    _, A = action.shape
    dS, dA, H1, H2 = dims
    if (S, A) != (dS, dA):
        raise ValueError(f"state/action dims {(S, A)} do not match packed dims {(dS, dA)}")
    lay = _slab_layout(S, A, H1, H2)
    R, C = packed_params.shape
    if (R, C) != (lay["rows"], lay["cols"]):
        raise ValueError("packed_params shape does not match the slab layout")

    bb = _choose_batch_tile(B, block_b, min_grid_steps)
    nb = pl.cdiv(B, bb)

    kernel = functools.partial(_critic_twin_kernel, S=S, A=A, H1=H1, H2=H2,
                               lay=lay, precision=precision)

    out = pl.pallas_call(
        kernel,
        out_shape=jax.ShapeDtypeStruct((2, B), jnp.float32),
        grid=(nb,),
        in_specs=[
            pl.BlockSpec((bb, S), lambda i: (i, 0)),   # state tile
            pl.BlockSpec((bb, A), lambda i: (i, 0)),   # action tile
            pl.BlockSpec((R, C), lambda i: (0, 0)),    # params: VMEM-resident across tiles
        ],
        out_specs=pl.BlockSpec((2, bb), lambda i: (0, i)),   # lane-dense (batch in lanes)
        compiler_params=pltpu.CompilerParams(
            dimension_semantics=("parallel",)),        # batch tiles independent (v7x: 2 TCs)
    )(state, action, packed_params)

    if return_stacked:
        return out
    value1 = out[0][:, None]   # (B, 1), critic1
    value2 = out[1][:, None]   # (B, 1), critic2
    return value1, value2


def init_params(key, input_dim, hidden_dim):
    """Deterministic synthetic init; shapes match MLP(input_dim, hidden_dim, 1).
    Weights stored as (in, out) == torch Linear weight^T, stacked over 2 critics."""
    h1, h2 = hidden_dim
    keys = jax.random.split(key, 6)

    def uni(k, shape, fan_in):
        bound = 1.0 / jnp.sqrt(fan_in)
        return jax.random.uniform(k, shape, jnp.float32, -bound, bound)

    return {
        "w1": uni(keys[0], (2, input_dim, h1), input_dim),
        "b1": uni(keys[1], (2, 1, h1), input_dim),
        "w2": uni(keys[2], (2, h1, h2), h1),
        "b2": uni(keys[3], (2, 1, h2), h1),
        "w3": uni(keys[4], (2, h2, 1), h2),
        "b3": uni(keys[5], (2, 1, 1), h2),
    }


def _reference_forward(state, action, params,
                       precision=jax.lax.Precision.HIGHEST):
    """Plain-JAX reference identical to the PyTorch module semantics."""
    x = jnp.concatenate([state, action], axis=-1)
    outs = []
    for c in range(2):
        h = jnp.maximum(jnp.dot(x, params["w1"][c], precision=precision)
                        + params["b1"][c], 0.0)
        h = jnp.maximum(jnp.dot(h, params["w2"][c], precision=precision)
                        + params["b2"][c], 0.0)
        outs.append(jnp.dot(h, params["w3"][c], precision=precision)
                    + params["b3"][c])
    return outs[0], outs[1]


if __name__ == "__main__":
    key = jax.random.PRNGKey(0)
    k_state, k_action, k_params, k_state2, k_action2 = jax.random.split(key, 5)

    batch = 8
    state_dim = 12
    action_dim = 4
    input_dim = state_dim + action_dim   # 16
    hidden_dim = [32, 32]

    params = init_params(k_params, input_dim, hidden_dim)
    packed, dims = pack_params(params, state_dim)   # pack once (outside any training loop)

    # --- check 1: demo-size batch (single full-batch tile) ------------------
    state = jax.random.normal(k_state, (batch, state_dim), jnp.float32)
    action = jax.random.normal(k_action, (batch, action_dim), jnp.float32)
    v1, v2 = sac_critic_twin_forward(state, action, packed, dims)
    jax.block_until_ready((v1, v2))

    r1, r2 = _reference_forward(state, action, params)
    assert v1.shape == (batch, 1) and v2.shape == (batch, 1)
    # Kernel and reference both use HIGHEST matmul precision; tolerance left
    # loose enough to be robust (a real packing bug produces O(0.1)+ errors).
    assert jnp.allclose(v1, r1, atol=1e-3, rtol=1e-3), "critic1 mismatch"
    assert jnp.allclose(v2, r2, atol=1e-3, rtol=1e-3), "critic2 mismatch"

    # --- check 2: batch not divisible by the tile (partial last tile path) --
    big_b = 300
    state2 = jax.random.normal(k_state2, (big_b, state_dim), jnp.float32)
    action2 = jax.random.normal(k_action2, (big_b, action_dim), jnp.float32)
    t1, t2 = sac_critic_twin_forward(state2, action2, packed, dims,
                                     block_b=128, min_grid_steps=2)
    jax.block_until_ready((t1, t2))
    s1, s2 = _reference_forward(state2, action2, params)
    assert t1.shape == (big_b, 1) and t2.shape == (big_b, 1)
    assert jnp.allclose(t1, s1, atol=1e-3, rtol=1e-3), "critic1 mismatch (tiled)"
    assert jnp.allclose(t2, s2, atol=1e-3, rtol=1e-3), "critic2 mismatch (tiled)"

    print("KERNEL_OK")
</pallas_src>

<mosaic_0001>
module attributes {stable_mosaic.version = 11 : i64} {
  func.func @_critic_twin_kernel(%arg0: i32, %arg1: memref<8x12xf32, #tpu.memory_space<vmem>>, %arg2: memref<8x4xf32, #tpu.memory_space<vmem>>, %arg3: memref<120x64xf32, #tpu.memory_space<vmem>>, %arg4: memref<2x8xf32, #tpu.memory_space<vmem>>) attributes {dimension_semantics = [#tpu.dimension_semantics<parallel>], iteration_bounds = array<i64: 1>, scalar_prefetch = 0 : i64, scratch_operands = 0 : i64, tpu.core_type = #tpu.core_type<tc>, window_params = [{transform_indices = @transform_0, window_bounds = array<i64: 8, 12>}, {transform_indices = @transform_1, window_bounds = array<i64: 8, 4>}, {pipeline_mode = #tpu.pipeline_mode<synchronous>, transform_indices = @transform_2, window_bounds = array<i64: 120, 64>}, {transform_indices = @transform_3, window_bounds = array<i64: 2, 8>}]} {
    %c0 = arith.constant 0 : index
    %c0_0 = arith.constant 0 : index
    %0 = vector.load %arg3[%c0, %c0_0] : memref<120x64xf32, #tpu.memory_space<vmem>>, vector<12x64xf32>
    %c16 = arith.constant 16 : index
    %c0_1 = arith.constant 0 : index
    %1 = vector.load %arg3[%c16, %c0_1] : memref<120x64xf32, #tpu.memory_space<vmem>>, vector<4x64xf32>
    %c24 = arith.constant 24 : index
    %c0_2 = arith.constant 0 : index
    %2 = vector.load %arg3[%c24, %c0_2] : memref<120x64xf32, #tpu.memory_space<vmem>>, vector<64x64xf32>
    %c88 = arith.constant 88 : index
    %c0_3 = arith.constant 0 : index
    %3 = vector.load %arg3[%c88, %c0_3] : memref<120x64xf32, #tpu.memory_space<vmem>>, vector<1x64xf32>
    %c96 = arith.constant 96 : index
    %c0_4 = arith.constant 0 : index
    %4 = vector.load %arg3[%c96, %c0_4] : memref<120x64xf32, #tpu.memory_space<vmem>>, vector<1x64xf32>
    %c104 = arith.constant 104 : index
    %c0_5 = arith.constant 0 : index
    %5 = vector.load %arg3[%c104, %c0_5] : memref<120x64xf32, #tpu.memory_space<vmem>>, vector<2x64xf32>
    %c112 = arith.constant 112 : index
    %c0_6 = arith.constant 0 : index
    %6 = vector.load %arg3[%c112, %c0_6] : memref<120x64xf32, #tpu.memory_space<vmem>>, vector<2x1xf32>
    %c0_7 = arith.constant 0 : index
    %c0_8 = arith.constant 0 : index
    %7 = vector.load %arg1[%c0_7, %c0_8] : memref<8x12xf32, #tpu.memory_space<vmem>>, vector<8x12xf32>
    %cst = arith.constant dense<0.000000e+00> : vector<8x64xf32>
    %8 = tpu.matmul %7, %0, %cst {dimension_numbers = #tpu.dot_dimension_numbers<[1], [0], [0], [1], [0, 0, 1, 1], [], []>, precision = #tpu.contract_precision<fp32>} : vector<8x12xf32>, vector<12x64xf32>, vector<8x64xf32> -> vector<8x64xf32>
    %c0_9 = arith.constant 0 : index
    %c0_10 = arith.constant 0 : index
    %9 = vector.load %arg2[%c0_9, %c0_10] : memref<8x4xf32, #tpu.memory_space<vmem>>, vector<8x4xf32>
    %cst_11 = arith.constant dense<0.000000e+00> : vector<8x64xf32>
    %10 = tpu.matmul %9, %1, %cst_11 {dimension_numbers = #tpu.dot_dimension_numbers<[1], [0], [0], [1], [0, 0, 1, 1], [], []>, precision = #tpu.contract_precision<fp32>} : vector<8x4xf32>, vector<4x64xf32>, vector<8x64xf32> -> vector<8x64xf32>
    %11 = arith.addf %8, %10 : vector<8x64xf32>
    %12 = vector.broadcast %3 : vector<1x64xf32> to vector<8x64xf32>
    %13 = arith.addf %11, %12 : vector<8x64xf32>
    %cst_12 = arith.constant 0.000000e+00 : f32
    %14 = vector.broadcast %cst_12 : f32 to vector<8x64xf32>
    %15 = arith.maximumf %13, %14 : vector<8x64xf32>
    %cst_13 = arith.constant dense<0.000000e+00> : vector<8x64xf32>
    %16 = tpu.matmul %15, %2, %cst_13 {dimension_numbers = #tpu.dot_dimension_numbers<[1], [0], [0], [1], [0, 0, 1, 1], [], []>, precision = #tpu.contract_precision<fp32>} : vector<8x64xf32>, vector<64x64xf32>, vector<8x64xf32> -> vector<8x64xf32>
    %17 = vector.broadcast %4 : vector<1x64xf32> to vector<8x64xf32>
    %18 = arith.addf %16, %17 : vector<8x64xf32>
    %cst_14 = arith.constant 0.000000e+00 : f32
    %19 = vector.broadcast %cst_14 : f32 to vector<8x64xf32>
    %20 = arith.maximumf %18, %19 : vector<8x64xf32>
    %cst_15 = arith.constant dense<0.000000e+00> : vector<2x8xf32>
    %21 = tpu.matmul %5, %20, %cst_15 {dimension_numbers = #tpu.dot_dimension_numbers<[1], [1], [0], [0], [0, 0, 1, 0], [], []>, precision = #tpu.contract_precision<fp32>} : vector<2x64xf32>, vector<8x64xf32>, vector<2x8xf32> -> vector<2x8xf32>
    %22 = vector.broadcast %6 : vector<2x1xf32> to vector<2x8xf32>
    %23 = arith.addf %21, %22 : vector<2x8xf32>
    %c0_16 = arith.constant 0 : index
    %c0_17 = arith.constant 0 : index
    %24 = vector.load %arg4[%c0_16, %c0_17] : memref<2x8xf32, #tpu.memory_space<vmem>>, vector<2x8xf32>
    tpu.vector_store %arg4[%c0_16, %c0_17], %23 {strides = array<i32>} : memref<2x8xf32, #tpu.memory_space<vmem>>, vector<2x8xf32>,
    return
  }
  func.func @transform_0(%arg0: i32) -> (i32, i32) {
    %c0_i32 = arith.constant 0 : i32
    %c0_i32_0 = arith.constant 0 : i32
    return %arg0, %c0_i32 : i32, i32
  }
  func.func @transform_1(%arg0: i32) -> (i32, i32) {
    %c0_i32 = arith.constant 0 : i32
    %c0_i32_0 = arith.constant 0 : i32
    return %arg0, %c0_i32 : i32, i32
  }
  func.func @transform_2(%arg0: i32) -> (i32, i32) {
    %c0_i32 = arith.constant 0 : i32
    %c0_i32_0 = arith.constant 0 : i32
    %c0_i32_1 = arith.constant 0 : i32
    return %c0_i32, %c0_i32_0 : i32, i32
  }
  func.func @transform_3(%arg0: i32) -> (i32, i32) {
    %c0_i32 = arith.constant 0 : i32
    %c0_i32_0 = arith.constant 0 : i32
    return %c0_i32, %arg0 : i32, i32
  }
}

</mosaic_0001>

<bundles_post_ra>
// kernel: tpu_custom_call.1
= control target key start
LH: loop header
LB: loop body
LE: loop exit
PB: predicated region body
PF: predicated region fallthrough
CT: control target
= control target key end

     0   :  { %vm36_vm0 = vcmask 1043456   ;;  %v2432_v2 = vmov 0.0   ;;  %vm2433_vm1 = vmmov 0   ;;  %vm32_vm2 = vcmask 31744   ;;  %s2695_s0 = inlined_call_operand.vmem [shape: f32[8,12], index: 0, kind: input, shape index: {}]   ;;  %s2696_s1 = inlined_call_operand.vmem [shape: f32[8,4], index: 1, kind: input, shape index: {}]   ;;  %s2697_s2 = inlined_call_operand.vmem [shape: f32[120,64], index: 2, kind: input, shape index: {}]   ;;  %s2698_s3 = inlined_call_operand.hbm [shape: f32[2,8], index: 3, kind: output, shape index: {}]  }
   0x1   :  { %v17_v0 = vld [vmem:[%s2697_s2 + $0x10] sm:$0xf]  ;;  %v31_v1 = vld [vmem:[%s2696_s1] sm:$0xff]  ;;  %2075 = vmatprep.subr.mxu1 %v2432_v2  ;;  %2077 = vmatprep.mubr.msk.f32.mxu1 %vm2433_vm1, %v2432_v2  ;;  %v16_v5 = vld [vmem:[%s2697_s2 + $0x8] sm:$0xf]  ;;  %vm486_vm3 = vcmask 97280  }
   0x2   :  { %v38_v3 = vsel %vm36_vm0, %v17_v0, 0  ;;  %v15_v4 = vld [vmem:[%s2697_s2] sm:$0xff]  ;;  %v34_v7 = vsel %vm32_vm2, %v31_v1, 0  ;;  %2085 = vmatprep.subr.mxu0 %v2432_v2  ;;  %2087 = vmatprep.mubr.msk.f32.mxu0 %vm2433_vm1, %v2432_v2  ;;  %v491_v8 = vsel %vm36_vm0, %v16_v5, 0 }
   0x3   :  { %v2472_v6 = vand.u32 4294901760, %v38_v3  ;;  %v494_v9 = vand.u32 4294901760, %v15_v4  ;;  %v30_v10 = vld [vmem:[%s2695_s0] sm:$0xff]  ;;  %v2480_v11 = vand.u32 4294901760, %v34_v7  ;;  %v497_v12 = vand.u32 4294901760, %v491_v8 }
   0x4   :  { %8 = vsyncpa [#allocation3], 0  ;;  %v488_v14 = vsel %vm486_vm3, %v30_v10, 0  ;;  %v2434_v25 = vmov 0.0|0.0   ;;  %v18_v40 = vld [vmem:[%s2697_s2 + $0x18] sm:$0xff]  ;;  %v19_v41 = vld [vmem:[%s2697_s2 + $0x20] sm:$0xff] }
   0x5   :  { %2076 = vmatpush3.msra.mxu1 %v2472_v6  ;;  %v118_v13 = vsub.f32 %v38_v3, %v2472_v6  ;;  %v107_v15 = vsub.f32 %v34_v7, %v2480_v11  ;;  %v2486_v16 = vand.u32 4294901760, %v488_v14  ;;  %v572_v18 = vsub.f32 %v15_v4, %v494_v9  ;;  %v20_v46 = vld [vmem:[%s2697_s2 + $0x28] sm:$0xff]  ;;  %v21_v47 = vld [vmem:[%s2697_s2 + $0x30] sm:$0xff]  ;;  %v22_v53 = vld [vmem:[%s2697_s2 + $0x38] sm:$0xff] }
   0x6   :  { %2080 = vmatprep.subr.mxu1 %v2432_v2  ;;  %v579_v19 = vsub.f32 %v491_v8, %v497_v12  ;;  %v2292_v23 = vpack.c.bf16 %v497_v12, %v494_v9  ;;  %v967_v42 = vand.u32 4294901760, %v18_v40  ;;  %v970_v43 = vand.u32 4294901760, %v19_v41  ;;  %v23_v54 = vld [vmem:[%s2697_s2 + $0x40] sm:$0xff]  ;;  %v24_v61 = vld [vmem:[%s2697_s2 + $0x48] sm:$0xff]  ;;  %v25_v62 = vld [vmem:[%s2697_s2 + $0x50] sm:$0xff] }
   0x7   :  { %v119_v17 = vand.u32 4294901760, %v118_v13  ;;  %2086 = vmatpush3.msra.mxu0 %v118_v13  ;;  %v108_v20 = vand.u32 4294901760, %v107_v15  ;;  %v561_v21 = vsub.f32 %v488_v14, %v2486_v16  ;;  %v573_v28 = vand.u32 4294901760, %v572_v18 }
   0x8   :  { %2088 = vmatmul.mubr.f32.vlgmr.msra.gmra.mrb[0].mxu0 %v107_v15  ;;  %2095 = vmatprep.subr.mxu0 %v2432_v2  ;;  %v580_v29 = vand.u32 4294901760, %v579_v19  ;;  %v2298_v32 = vpack.c.bf16 %v579_v19, %v572_v18  ;;  %v2538_v44 = vsub.f32 %v18_v40, %v967_v42  ;;  %v2540_v45 = vsub.f32 %v19_v41, %v970_v43 }
   0x9   :  { %v120_v22 = vsub.f32 %v118_v13, %v119_v17  ;;  %2096 = vmatpush3.msra.mxu0 %v119_v17  ;;  %2097 = vmatprep.mubr.msk.f32.mxu0 %vm2433_vm1, %v2432_v2  ;;  %v109_v24 = vsub.f32 %v107_v15, %v108_v20  ;;  %v562_v26 = vand.u32 4294901760, %v561_v21  ;;  %v574_v34 = vsub.f32 %v572_v18, %v573_v28 }
   0xa   :  { %2291 = vmatprep.subr.bf16.mxu0 %v2434_v25  ;;  %v581_v35 = vsub.f32 %v579_v19, %v580_v29  ;;  %v2304_v36 = vpack.c.bf16 %v580_v29, %v573_v28  ;;  %v2334_v48 = vpack.c.bf16 %v2540_v45, %v2538_v44  ;;  %v973_v49 = vand.u32 4294901760, %v20_v46 }
   0xb   :  { %v121_v27 = vand.u32 4294901760, %v120_v22  ;;  %v110_v30 = vand.u32 4294901760, %v109_v24  ;;  %v563_v31 = vsub.f32 %v561_v21, %v562_v26  ;;  %v575_v37 = vand.u32 4294901760, %v574_v34 }
   0xc   :  { %2098 = vmatmul.mubr.f32.vlgmr.msra.gmra.mrb[2].mxu0 %v2480_v11  ;;  %v582_v38 = vand.u32 4294901760, %v581_v35  ;;  %v976_v50 = vand.u32 4294901760, %v21_v47  ;;  %v2550_v51 = vsub.f32 %v20_v46, %v973_v49  ;;  %v979_v56 = vand.u32 4294901760, %v22_v53 }
   0xd   :  { %2293 = vmatpush3.bf16.msra.mxu0 %v2292_v23  ;;  %2109 = vmatprep.mubr.msk.f32.mxu0 %vm2433_vm1, %v2432_v2  ;;  %v564_v33 = vand.u32 4294901760, %v563_v31  ;;  %v982_v57 = vand.u32 4294901760, %v23_v54  ;;  %v2563_v58 = vpack.c.bf16 %v970_v43, %v967_v42  ;;  %v985_v0 = vand.u32 4294901760, %v24_v61 }
   0xe   :  { %2078 = vmatmul.mubr.f32.vlgmr.msra.gmra.mrb[0].mxu1 %v110_v30  ;;  %2297 = vmatprep.subr.bf16.mxu0 %v2434_v25  ;;  %v2295_v39 = vpack.c.bf16 %v582_v38, %v575_v37  ;;  %v2552_v52 = vsub.f32 %v21_v47, %v976_v50  ;;  %v1079_v59 = vsub.f32 %v22_v53, %v979_v56  ;;  %v988_v1 = vand.u32 4294901760, %v25_v62 }
   0xf   :  { %2081 = vmatpush3.msra.mxu1 %v121_v27  ;;  %2082 = vmatprep.mubr.msk.f32.mxu1 %vm2433_vm1, %v2432_v2  ;;  %v1086_v60 = vsub.f32 %v23_v54, %v982_v57  ;;  %v2574_v3 = vpack.c.bf16 %v976_v50, %v973_v49  ;;  %v1093_v4 = vsub.f32 %v24_v61, %v985_v0  ;;  %v1052_v8 = vand.u32 4294901760, %v2538_v44 }
  0x10   :  { %2090 = vmatprep.subr.mxu1 %v2432_v2  ;;  %2110 = vmatmul.mubr.f32.vlgmr.msra.gmra.mrb[4].mxu0 %v564_v33  ;;  %v2337_v55 = vpack.c.bf16 %v2552_v52, %v2550_v51  ;;  %v1100_v5 = vsub.f32 %v25_v62, %v988_v1  ;;  %v2579_v7 = vpack.c.bf16 %v982_v57, %v979_v56  ;;  %v1059_v9 = vand.u32 4294901760, %v2540_v45 }
  0x11   :  { %2299 = vmatpush3.bf16.msra.mxu0 %v2298_v32  ;;  %2123 = vmatprep.mubr.msk.f32.mxu0 %vm2433_vm1, %v2432_v2  ;;  %v2340_v63 = vpack.c.bf16 %v1086_v60, %v1079_v59  ;;  %v2586_v10 = vpack.c.bf16 %v988_v1, %v985_v0  ;;  %v1066_v15 = vand.u32 4294901760, %v2550_v51  ;;  %v1080_v22 = vand.u32 4294901760, %v1079_v59 }
  0x12   :  { %2083 = vmatmul.mubr.f32.vlgmr.msra.gmra.mrb[2].mxu1 %v2480_v11  ;;  %2303 = vmatprep.subr.bf16.mxu0 %v2434_v25  ;;  %v1060_v12 = vsub.f32 %v2540_v45, %v1059_v9  ;;  %v1094_v30 = vand.u32 4294901760, %v1093_v4  ;;  %v1101_v31 = vand.u32 4294901760, %v1100_v5  ;;  %v2602_v35 = vpack.c.bf16 %v1059_v9, %v1052_v8 }
  0x13   :  { %2091 = vmatpush3.msra.mxu1 %v2472_v6  ;;  %2092 = vmatprep.mubr.msk.f32.mxu1 %vm2433_vm1, %v2432_v2  ;;  %v1067_v18 = vsub.f32 %v2550_v51, %v1066_v15  ;;  %vm962_vm4 = vcmask 523264   ;;  %vm1961_vm5 = vcmask 58368  }
  0x14   :  { %2100 = vmatprep.subr.mxu1 %v2432_v2  ;;  %2124 = vmatmul.mubr.f32.vlgmr.msra.gmra.mrb[6].mxu0 %v561_v21  ;;  %v1061_v14 = vand.u32 4294901760, %v1060_v12  ;;  %v1095_v33 = vsub.f32 %v1093_v4, %v1094_v30  ;;  %v1102_v34 = vsub.f32 %v1100_v5, %v1101_v31  ;;  %v2610_v41 = vpack.c.bf16 %v1101_v31, %v1094_v30 }
  0x15   :  { %2305 = vmatpush3.bf16.msra.mxu0 %v2304_v36  ;;  %2137 = vmatprep.mubr.msk.f32.mxu0 %vm2433_vm1, %v2432_v2 }
  0x16   :  { %2093 = vmatmul.mubr.f32.vlgmr.msra.gmra.mrb[4].mxu1 %v108_v20  ;;  %2333 = vmatprep.subr.bf16.mxu0 %v2434_v25  ;;  %v1068_v20 = vand.u32 4294901760, %v1067_v18  ;;  %v1096_v36 = vand.u32 4294901760, %v1095_v33  ;;  %v1103_v37 = vand.u32 4294901760, %v1102_v34 }
  0x17   :  { %2101 = vmatpush3.msra.mxu1 %v2472_v6  ;;  %2102 = vmatprep.mubr.msk.f32.mxu1 %vm2433_vm1, %v2432_v2  ;;  %v2343_v6 = vpack.c.bf16 %v1100_v5, %v1093_v4 }
  0x18   :  { %2294 = vmatprep.subr.bf16.mxu1 %v2434_v25  ;;  %2138 = vmatmul.mubr.f32.vlgmr.msra.gmra.mrb[8].mxu0 %v2486_v16  ;;  %v2604_v38 = vpack.c.bf16 %v1103_v37, %v1096_v36 }
  0x19   :  { %2201 = vmatprep.mubr.msk.f32.mxu0 %vm2433_vm1, %v2432_v2  ;;  %2335 = vmatpush3.bf16.msra.mxu0 %v2334_v48 }
  0x1a   :  { %2103 = vmatmul.mubr.f32.vlgmr.msra.gmra.mrb[6].mxu1 %v2480_v11  ;;  %2336 = vmatprep.subr.bf16.mxu0 %v2434_v25  ;;  %v1053_v11 = vsub.f32 %v2538_v44, %v1052_v8 }
  0x1b   :  { %2296 = vmatpush3.bf16.msra.mxu1 %v2295_v39  ;;  %2116 = vmatprep.mubr.msk.f32.mxu1 %vm2433_vm1, %v2432_v2 }
  0x1c   :  { %2300 = vmatprep.subr.bf16.mxu1 %v2434_v25  ;;  %v1054_v13 = vand.u32 4294901760, %v1053_v11 }
  0x1d   :  { %2338 = vmatpush3.bf16.msra.mxu0 %v2337_v55 }
  0x1e   :  { %2117 = vmatmul.mubr.f32.vlgmr.msra.gmra.mrb[8].mxu1 %v2486_v16  ;;  %2339 = vmatprep.subr.bf16.mxu0 %v2434_v25  ;;  %v2594_v17 = vpack.c.bf16 %v1061_v14, %v1054_v13 }
  0x1f   :  { %2302 = vmatpush3.bf16.msra.mxu1 %v2292_v23  ;;  %2130 = vmatprep.mubr.msk.f32.mxu1 %vm2433_vm1, %v2432_v2 }
  0x20   :  { %2306 = vmatprep.subr.bf16.mxu1 %v2434_v25 }
  0x21   :  { %2341 = vmatpush3.bf16.msra.mxu0 %v2340_v63 }
  0x22   :  { %2131 = vmatmul.mubr.f32.vlgmr.msra.gmra.mrb[10].mxu1 %v562_v26  ;;  %2342 = vmatprep.subr.bf16.mxu0 %v2434_v25  ;;  %v1081_v26 = vsub.f32 %v1079_v59, %v1080_v22 }
  0x23   :  { %2308 = vmatpush3.bf16.msra.mxu1 %v2292_v23  ;;  %2144 = vmatprep.mubr.msk.f32.mxu1 %vm2433_vm1, %v2432_v2  ;;  %v1087_v23 = vand.u32 4294901760, %v1086_v60 }
  0x24   :  { %2309 = vmatprep.subr.bf16.mxu1 %v2434_v25  ;;  %v1082_v28 = vand.u32 4294901760, %v1081_v26 }
  0x25   :  { %2344 = vmatpush3.bf16.msra.mxu0 %v2343_v6  ;;  %v1088_v27 = vsub.f32 %v1086_v60, %v1087_v23  ;;  %v2608_v40 = vpack.c.bf16 %v1087_v23, %v1080_v22 }
  0x26   :  { %2145 = vmatmul.mubr.f32.vlgmr.msra.gmra.mrb[12].mxu1 %v2486_v16  ;;  %2345 = vmatprep.subr.bf16.mxu0 %v2434_v25  ;;  %v1073_v16 = vand.u32 4294901760, %v2552_v52 }
  0x27   :  { %2163 = vmatprep.mubr.msk.f32.mxu1 %vm2433_vm1, %v2432_v2  ;;  %2311 = vmatpush3.bf16.msra.mxu1 %v2563_v58  ;;  %v1089_v29 = vand.u32 4294901760, %v1088_v27 }
  0x28   :  { %2312 = vmatprep.subr.bf16.mxu1 %v2434_v25  ;;  %v1074_v19 = vsub.f32 %v2552_v52, %v1073_v16  ;;  %v2606_v39 = vpack.c.bf16 %v1073_v16, %v1066_v15  ;;  %v1977_v15 = vld [vmem:[%s2697_s2 + $0x58] ss:$0 sm:$0xff] }
  0x29   :  { %v2600_v32 = vpack.c.bf16 %v1089_v29, %v1082_v28 }
  0x2a   :  { %v1075_v21 = vand.u32 4294901760, %v1074_v19 }
  0x2b   :  { %2314 = vmatpush3.bf16.msra.mxu1 %v2574_v3 }
  0x2c   :  { %2315 = vmatprep.subr.bf16.mxu1 %v2434_v25  ;;  %v2598_v24 = vpack.c.bf16 %v1075_v21, %v1068_v20 }
  0x2f   :  { %2317 = vmatpush3.bf16.msra.mxu1 %v2579_v7 }
  0x30   :  { %2318 = vmatprep.subr.bf16.mxu1 %v2434_v25 }
  0x33   :  { %2320 = vmatpush3.bf16.msra.mxu1 %v2586_v10 }
  0x34   :  { %2321 = vmatprep.subr.bf16.mxu1 %v2434_v25 }
  0xdb   :  { %v262_v42 = vpop.f32.mrb[0].mxu0 }
  0xdc   :  { %v2089_v43 = vpop.f32.mrb[1].mxu0 }
  0xdf   :  { %v410_v44 = vpop.f32.mrb[2].mxu0 }
  0xe0   :  { %v2099_v45 = vpop.f32.mrb[3].mxu0 }
  0xe1   :  { %v112_v46 = vpop.f32.mrb[0].mxu1 }
  0xe2   :  { %v2079_v47 = vpop.f32.mrb[1].mxu1 }
  0xe3   :  { %v566_v48 = vpop.f32.mrb[4].mxu0 }
  0xe4   :  { %v2111_v49 = vpop.f32.mrb[5].mxu0 }
  0xe5   :  { %v188_v50 = vpop.f32.mrb[2].mxu1 }
  0xe6   :  { %v189_v51 = vadd.f32 %v188_v50, %v112_v46  ;;  %v2084_v52 = vpop.f32.mrb[3].mxu1 }
  0xe7   :  { %v723_v53 = vpop.f32.mrb[6].mxu0 }
  0xe8   :  { %v263_v54 = vadd.f32 %v262_v42, %v189_v51  ;;  %v2125_v55 = vpop.f32.mrb[7].mxu0 }
  0xe9   :  { %v336_v56 = vpop.f32.mrb[4].mxu1 }
  0xea   :  { %v337_v57 = vadd.f32 %v336_v56, %v263_v54  ;;  %v2094_v59 = vpop.f32.mrb[5].mxu1 }
  0xeb   :  { %v875_v60 = vpop.f32.mrb[8].mxu0 }
  0xec   :  { %v411_v61 = vadd.f32 %v410_v44, %v337_v57  ;;  %v2139_v62 = vpop.f32.mrb[9].mxu0 }
  0xed   :  { %v482_v63 = vpop.f32.mrb[6].mxu1 }
  0xee   :  { %v483_v0 = vadd.f32 %v482_v63, %v411_v61  ;;  %v2104_v1 = vpop.f32.mrb[7].mxu1 }
  0xf0   :  { %v567_v4 = vadd.f32 %v566_v48, %v483_v0 }
  0xf1   :  { %v647_v5 = vpop.f32.mrb[8].mxu1 }
  0xf2   :  { %v648_v6 = vadd.f32 %v647_v5, %v567_v4  ;;  %v2118_v8 = vpop.f32.mrb[9].mxu1 }
  0xf4   :  { %v724_v9 = vadd.f32 %v723_v53, %v648_v6 }
  0xf5   :  { %v798_v11 = vpop.f32.mrb[10].mxu1 }
  0xf6   :  { %v799_v12 = vadd.f32 %v798_v11, %v724_v9  ;;  %v2132_v13 = vpop.f32.mrb[11].mxu1 }
  0xf8   :  { %v876_v14 = vadd.f32 %v875_v60, %v799_v12 }
  0xf9   :  { %v948_v16 = vpop.f32.mrb[12].mxu1 }
  0xfa   :  { %v949_v18 = vadd.f32 %v948_v16, %v876_v14  ;;  %v2146_v19 = vpop.f32.mrb[13].mxu1 }
  0xfc   :  { %v956_v20 = vadd.f32 %v1977_v15, %v949_v18 }
  0xfe   :  { %v957_v21 = vmax.f32 %v956_v20, 0.0 }
 0x100   :  { %v964_v22 = vsel %vm962_vm4, %v957_v21, 0 }
 0x101   :  { %v1039_v23 = vand.u32 4294901760, %v964_v22 }
 0x103   :  { %v1040_v26 = vsub.f32 %v964_v22, %v1039_v23 }
 0x105   :  { %2202 = vmatmul.mubr.f32.vlgmr.msra.gmra.mrb[10].mxu0 %v1040_v26  ;;  %v1041_v27 = vand.u32 4294901760, %v1040_v26 }
 0x106   :  { %2347 = vmatpush3.bf16.msra.mxu0 %v2563_v58  ;;  %2220 = vmatprep.mubr.msk.f32.mxu0 %vm2433_vm1, %v2432_v2 }
 0x107   :  { %2348 = vmatprep.subr.bf16.mxu0 %v2434_v25  ;;  %v1042_v28 = vsub.f32 %v1040_v26, %v1041_v27 }
 0x109   :  { %v1043_v29 = vand.u32 4294901760, %v1042_v28 }
 0x10a   :  { %2350 = vmatpush3.bf16.msra.mxu0 %v2574_v3 }
 0x10b   :  { %2164 = vmatmul.mubr.f32.vlgmr.msra.gmra.mrb[14].mxu1 %v1043_v29  ;;  %2351 = vmatprep.subr.bf16.mxu0 %v2434_v25 }
 0x10c   :  { %2323 = vmatpush3.bf16.msra.mxu1 %v2594_v17  ;;  %2182 = vmatprep.mubr.msk.f32.mxu1 %vm2433_vm1, %v2432_v2  ;;  %v2435_v17 = vmov 0  }
 0x10d   :  { %2324 = vmatprep.subr.bf16.mxu1 %v2434_v25  ;;  %2407 = vset.pattern.permute.xlu0 %v2435_v17 }
 0x10e   :  { %2353 = vmatpush3.bf16.msra.mxu0 %v2579_v7 }
 0x10f   :  { %2354 = vmatprep.subr.bf16.mxu0 %v2434_v25 }
 0x110   :  { %2326 = vmatpush3.bf16.msra.mxu1 %v2598_v24 }
 0x111   :  { %2327 = vmatprep.subr.bf16.mxu1 %v2434_v25 }
 0x112   :  { %2356 = vmatpush3.bf16.msra.mxu0 %v2586_v10 }
 0x113   :  { %2357 = vmatprep.subr.bf16.mxu0 %v2434_v25 }
 0x114   :  { %2329 = vmatpush3.bf16.msra.mxu1 %v2600_v32 }
 0x115   :  { %2221 = vmatmul.mubr.f32.vlgmr.msra.gmra.mrb[10].mxu0 %v1041_v27  ;;  %2330 = vmatprep.subr.bf16.mxu1 %v2434_v25 }
 0x116   :  { %2359 = vmatpush3.bf16.msra.mxu0 %v2602_v35  ;;  %2239 = vmatprep.mubr.msk.f32.mxu0 %vm2433_vm1, %v2432_v2 }
 0x117   :  { %2360 = vmatprep.subr.bf16.mxu0 %v2434_v25 }
 0x118   :  { %2332 = vmatpush3.bf16.msra.mxu1 %v2604_v38 }
 0x119   :  { %2261 = vmatprep.subr.mxu1 %v2432_v2 }
 0x11a   :  { %2362 = vmatpush3.bf16.msra.mxu0 %v2606_v39 }
 0x11b   :  { %2183 = vmatmul.mubr.f32.vlgmr.msra.gmra.mrb[14].mxu1 %v1039_v23  ;;  %2363 = vmatprep.subr.bf16.mxu0 %v2434_v25 }
 0x11c   :  { %2263 = vmatprep.mubr.msk.f32.mxu1 %vm2433_vm1, %v2432_v2 }
 0x11e   :  { %2365 = vmatpush3.bf16.msra.mxu0 %v2608_v40 }
 0x11f   :  { %2366 = vmatprep.subr.bf16.mxu0 %v2434_v25 }
 0x122   :  { %2368 = vmatpush3.bf16.msra.mxu0 %v2610_v41 }
 0x123   :  { %2369 = vmatprep.subr.bf16.mxu0 %v2434_v25 }
 0x125   :  { %2240 = vmatmul.mubr.f32.vlgmr.msra.gmra.mrb[10].mxu0 %v1039_v23 }
 0x126   :  { %2371 = vmatpush3.bf16.msra.mxu0 %v2563_v58  ;;  %2258 = vmatprep.mubr.msk.f32.mxu0 %vm2433_vm1, %v2432_v2  ;;  %v29_v58 = vld [vmem:[%s2697_s2 + $0x70] sm:$0x3] }
 0x127   :  { %2372 = vmatprep.subr.bf16.mxu0 %v2434_v25  ;;  %1506 = vperm.xlu0 %2407, %v29_v58  }
 0x12a   :  { %2374 = vmatpush3.bf16.msra.mxu0 %v2574_v3  ;;  %v28_v3 = vld [vmem:[%s2697_s2 + $0x68] sm:$0x3] }
 0x12b   :  { %2375 = vmatprep.subr.bf16.mxu0 %v2434_v25 }
 0x12e   :  { %2377 = vmatpush3.bf16.msra.mxu0 %v2579_v7  ;;  %v1510_v7 = vsel %vm962_vm4, %v28_v3, 0 }
 0x12f   :  { %2378 = vmatprep.subr.bf16.mxu0 %v2434_v25  ;;  %v1581_v31 = vand.u32 4294901760, %v1510_v7 }
 0x131   :  { %v1582_v25 = vsub.f32 %v1510_v7, %v1581_v31 }
 0x132   :  { %2380 = vmatpush3.bf16.msra.mxu0 %v2586_v10  ;;  %v1978_v10 = vld [vmem:[%s2697_s2 + $0x60] ss:$0 sm:$0xff]  ;;  %s2436_s2 = smov [#allocation2]  }
 0x133   :  { %v1583_v33 = vand.u32 4294901760, %v1582_v25  ;;  %s1969_s17 = sshll.u32 %s2436_s2, 4  ;;  %s1970_s17 = int_to_ptr.vmem [resolvable:$true] %s1969_s17 }
 0x134   :  { %s2408_s18 = scalar_lea.vmem %s1970_s17, 32  ;;  %p2413_p1 = scmp.lt.s32.totalorder %s1970_s17, %s1970_s17 }
 0x135   :  { %2259 = vmatmul.mubr.f32.vlgmr.msra.gmra.mrb[10].mxu0 %v1039_v23  ;;  %v1584_v38 = vsub.f32 %v1582_v25, %v1583_v33  ;;  %p2409_p0 = scmp.ne.s32.totalorder %s1970_s17, %s2408_s18  ;;  %p2414_p2 = scmp.lt.s32.totalorder %s2408_s18, %s2408_s18 }
 0x137   :  { %v1585_v41 = vand.u32 4294901760, %v1584_v38  ;;  %p2415_p3 = por %p2414_p2, %p2413_p1 }
 0x139   :  { %p2416_p4 = pnand %p2415_p3, %p2409_p0 }
 0x1a6   :  { %v1507_v46 = vpop.permute.xlu0 %1506 }
 0x1ee   :  { %v1156_v24 = vpop.f32.mrb[14].mxu1 }
 0x1ef   :  { %v2184_v30 = vpop.f32.mrb[15].mxu1  ;;  %v2381_v32 = vadd.f32 %v1978_v10, %v1156_v24 }
 0x208   :  { %v1499_v34 = vpop.f32.mrb[10].mxu0 }
 0x209   :  { %v2382_v35 = vadd.f32 %v2381_v32, %v1499_v34  ;;  %v2260_v36 = vpop.f32.mrb[11].mxu0 }
 0x20b   :  { %v1503_v37 = vmax.f32 %v2382_v35, 0.0 }
 0x20d   :  { %v1513_v39 = vsel %vm962_vm4, %v1503_v37, 0 }
 0x20e   :  { %v1516_v40 = vand.u32 4294901760, %v1513_v39 }
 0x210   :  { %v1593_v42 = vsub.f32 %v1513_v39, %v1516_v40  ;;  %2262 = vmatpush3.xpose.msra.mxu1 %v1516_v40 }
 0x211   :  { %2266 = vmatprep.subr.mxu1 %v2432_v2 }
 0x212   :  { %v1594_v43 = vand.u32 4294901760, %v1593_v42 }
 0x213   :  { %2264 = vmatmul.mubr.f32.vlgmr.msra.gmra.mrb[16].mxu1 %v1585_v41 }
 0x214   :  { %v1595_v44 = vsub.f32 %v1593_v42, %v1594_v43  ;;  %2268 = vmatprep.mubr.msk.f32.mxu1 %vm2433_vm1, %v2432_v2 }
 0x216   :  { %v1596_v45 = vand.u32 4294901760, %v1595_v44 }
 0x218   :  { %2267 = vmatpush3.xpose.msra.mxu1 %v1596_v45 }
 0x219   :  { %2271 = vmatprep.subr.mxu1 %v2432_v2 }
 0x21b   :  { %2269 = vmatmul.mubr.f32.vlgmr.msra.gmra.mrb[16].mxu1 %v1581_v31 }
 0x21c   :  { %2272 = vmatpush3.xpose.msra.mxu1 %v1593_v42  ;;  %2273 = vmatprep.mubr.msk.f32.mxu1 %vm2433_vm1, %v2432_v2 }
 0x21d   :  { %2276 = vmatprep.subr.mxu1 %v2432_v2 }
 0x223   :  { %2274 = vmatmul.mubr.f32.vlgmr.msra.gmra.mrb[16].mxu1 %v1582_v25 }
 0x224   :  { %2277 = vmatpush3.xpose.msra.mxu1 %v1516_v40  ;;  %2278 = vmatprep.mubr.msk.f32.mxu1 %vm2433_vm1, %v2432_v2 }
 0x225   :  { %2281 = vmatprep.subr.mxu1 %v2432_v2 }
 0x22b   :  { %2279 = vmatmul.mubr.f32.vlgmr.msra.gmra.mrb[16].mxu1 %v1583_v33 }
 0x22c   :  { %2282 = vmatpush3.xpose.msra.mxu1 %v1594_v43  ;;  %2283 = vmatprep.mubr.msk.f32.mxu1 %vm2433_vm1, %v2432_v2 }
 0x22d   :  { %2286 = vmatprep.subr.mxu1 %v2432_v2 }
 0x233   :  { %2284 = vmatmul.mubr.f32.vlgmr.msra.gmra.mrb[16].mxu1 %v1581_v31 }
 0x234   :  { %2287 = vmatpush3.xpose.msra.mxu1 %v1516_v40  ;;  %2288 = vmatprep.mubr.msk.f32.mxu1 %vm2433_vm1, %v2432_v2 }
 0x23b   :  { %2289 = vmatmul.mubr.f32.vlgmr.msra.gmra.mrb[16].mxu1 %v1581_v31 }
 0x30e   :  { %v1957_v47 = vpop.f32.mrb[16].mxu1 }
 0x30f   :  { %v2383_v48 = vadd.f32 %v1957_v47, %v1507_v46  ;;  %v2290_v49 = vpop.f32.mrb[17].mxu1 }
 0x311   :  { %1962 = vst.msk [vmem:[#allocation2] sm:$0x3] %vm1961_vm5, %v2383_v48 }
 0x312   :  { %2419 = shalt.err (!%p2416_p4)
}
 0x313   :  { %s2420_s20 = scalar_lea.hbm %s2698_s3, 32 }
 0x314   :  { %p2421_p5 = scmp.ne.s32.totalorder %s2698_s3, %s2420_s20  ;;  %p2424_p6 = scmp.lt.u32.totalorder %s2420_s20, %s2698_s3 }
 0x316   :  { %p2426_p7 = pnand %p2424_p6, %p2421_p5 }
 0x318   :  { %2429 = shalt.err (!%p2426_p7)
}
 0x319   :  { %1972 = dma.vmem_to_hbm [thread:$0]  %s1970_s17, 32, %s2698_s3, [#allocation3]  }
 0x31a   :  { %2430 = dma.done.wait [#allocation3], 32  }
 0x31b   :  { %2431 = vsyncadd [#allocation3], 4294967264 }
 0x31c   :  { %1976 = vsyncpa [#allocation3], 1 }

</bundles_post_ra>
